<compile_context>
chip_gen: v5e
topology: v5e:2x2
jax: 0.10.0
libtpu: 0.0.40
codegen_flags: <defaults>
</compile_context>

<pallas_src>
import math

import jax
import jax.numpy as jnp
from jax.experimental import pallas as pl
from jax.experimental.pallas import tpu as pltpu


# ----------------------------------------------------------------------------
# Default path: zero-DMA identity (no-op body, output aliases input in HBM).
# ----------------------------------------------------------------------------
def _alias_noop_kernel(x_ref, o_ref):
    # Output aliases the input buffer; there is nothing to compute or move.
    # TODO(synk): BaseNet.forward raises NotImplementedError in PyTorch; the
    # only semantics-preserving kernel for the base class is identity.
    del x_ref, o_ref


def _identity_zero_dma(x):
    return pl.pallas_call(
        _alias_noop_kernel,
        out_shape=jax.ShapeDtypeStruct(x.shape, x.dtype),
        in_specs=[pl.BlockSpec(memory_space=pl.ANY)],
        out_specs=pl.BlockSpec(memory_space=pl.ANY),
        # Output buffer == input buffer. Donate the input for true zero-copy.
        input_output_aliases={0: 0},
    )(x)


# ----------------------------------------------------------------------------
# Optional path: materialized copy into a fresh buffer (tiled HBM memcpy).
# ----------------------------------------------------------------------------
def _copy_kernel(x_ref, o_ref):
    o_ref[...] = x_ref[...]


# itemsize -> sublanes per packed tile (f32:8, bf16:16, int8/fp8:32)
_SUBLANES_PER_PACKED_TILE = {1: 32, 2: 16, 4: 8, 8: 8}
_TARGET_BLOCK_BYTES = 4 * 1024 * 1024   # 4 live buffers (in+out, double-buffered) = 16 MiB
_VMEM_LIMIT_BYTES = 32 * 1024 * 1024    # default on v6e/v7x; raises v5e's 16 MiB default


def _materialized_copy(x):
    shape, dtype = x.shape, x.dtype
    itemsize = jnp.dtype(dtype).itemsize
    sub = _SUBLANES_PER_PACKED_TILE.get(itemsize, 8)
    total = math.prod(shape)

    # Lane-dense 2-D view; pad ragged totals up to a multiple of (sub * lanes)
    # so the last dim is a 128 multiple and rows are a multiple of the packed
    # sublane count -> unmasked vst, no oversized single block possible.
    lanes = 512 if total >= 512 * sub else 128
    chunk = lanes * sub
    padded = pl.cdiv(total, chunk) * chunk

    flat = x.reshape(-1)
    if padded != total:
        flat = jnp.pad(flat, (0, padded - total))
    rows = padded // lanes            # multiple of `sub` by construction
    x2d = flat.reshape(rows, lanes)

    # ~4 MiB blocks, rounded to the packed sublane count.
    tile_r = (_TARGET_BLOCK_BYTES // (lanes * itemsize)) // sub * sub
    tile_r = max(sub, min(rows, tile_r))
    # Prefer an exact divisor of rows (no ragged tail block / masked stores).
    if rows % tile_r != 0:
        t = tile_r
        while t > sub and rows % t != 0:
            t -= sub
        if rows % t == 0:
            tile_r = t
    grid = (pl.cdiv(rows, tile_r),)

    out2d = pl.pallas_call(
        _copy_kernel,
        out_shape=jax.ShapeDtypeStruct((rows, lanes), dtype),
        grid=grid,
        in_specs=[pl.BlockSpec((tile_r, lanes), lambda i: (i, 0))],
        out_specs=pl.BlockSpec((tile_r, lanes), lambda i: (i, 0)),
        compiler_params=pltpu.CompilerParams(
            dimension_semantics=("parallel",),      # v7x: shard copy over 2 TCs
            vmem_limit_bytes=_VMEM_LIMIT_BYTES,
        ),
        cost_estimate=pl.CostEstimate(
            flops=0, transcendentals=0, bytes_accessed=2 * padded * itemsize),
    )(x2d)

    out = out2d.reshape(-1)
    if padded != total:
        out = out[:total]
    return out.reshape(shape)


# ----------------------------------------------------------------------------
# Public forward + init policy.
# ----------------------------------------------------------------------------
def basenet_forward(x_nchw: jax.Array, *, materialize_copy: bool = False) -> jax.Array:
    """Identity forward of BaseNet, executed through a Pallas TPU kernel.

    Default path moves zero bytes (output aliases the input HBM buffer).
    NOTE: donate the input (jax.jit(basenet_forward, donate_argnums=0)) for a
    true zero-copy; without donation XLA inserts one defensive copy and the
    input array remains valid after the call.
    Set materialize_copy=True to force a fresh output buffer via a tiled,
    lane-dense HBM memcpy kernel.
    """
    if materialize_copy:
        return _materialized_copy(x_nchw)
    return _identity_zero_dma(x_nchw)


def weights_init_gaussian(key, shape, dtype=jnp.float32):
    """Deterministic equivalent of BaseNet.weights_init('gaussian'):
    weight ~ N(0, 0.02), bias = 0.  (Init policy only — not part of forward.)"""
    w = 0.02 * jax.random.normal(key, shape, dtype=dtype)
    b = jnp.zeros((shape[0],), dtype=dtype)
    return w, b


if __name__ == "__main__":
    key = jax.random.PRNGKey(0)
    k_x, k_w = jax.random.split(key)

    # Small deterministic NCHW input consistent with a conv-style subclass.
    x = jax.random.normal(k_x, (2, 4, 16, 16), dtype=jnp.float32)

    # Demonstrate the gaussian init policy (no-op for the forward pass,
    # since BaseNet itself has no layers).
    _w, _b = weights_init_gaussian(k_w, (8, 4, 3, 3))

    # Default zero-DMA identity.
    y = jax.block_until_ready(basenet_forward(x))
    assert y.shape == x.shape and y.dtype == x.dtype
    assert bool(jnp.allclose(y, x))

    # Materialized-copy path (aligned case).
    y2 = jax.block_until_ready(basenet_forward(x, materialize_copy=True))
    assert y2.shape == x.shape and y2.dtype == x.dtype
    assert bool(jnp.allclose(y2, x))

    # Materialized-copy path: ragged total + sub-32-bit dtype (exercises the
    # lane-padding and packed-sublane tile rounding).
    x_ragged = jax.random.normal(k_w, (2, 3, 5, 7), dtype=jnp.bfloat16)
    y3 = jax.block_until_ready(basenet_forward(x_ragged, materialize_copy=True))
    assert y3.shape == x_ragged.shape and y3.dtype == x_ragged.dtype
    assert bool(jnp.all(y3 == x_ragged))

    print("KERNEL_OK")
</pallas_src>

<mosaic_0001>
module attributes {stable_mosaic.version = 11 : i64} {
  func.func @_alias_noop_kernel(%arg0: memref<2x4x16x16xf32, #tpu.memory_space<any>>, %arg1: memref<2x4x16x16xf32, #tpu.memory_space<any>>) attributes {dimension_semantics = [], scalar_prefetch = 0 : i64, scratch_operands = 0 : i64, tpu.core_type = #tpu.core_type<tc>} {
    return
  }
}

</mosaic_0001>

<bundles_post_ra>
// kernel: tpu_custom_call.1
= control target key start
LH: loop header
LB: loop body
LE: loop exit
PB: predicated region body
PF: predicated region fallthrough
CT: control target
= control target key end

     0   :  { %s16_s0 = inlined_call_operand.hbm [shape: f32[2,4,16,16], index: 0, kind: input, shape index: {}, may-alias: {0,1}]   ;;  %s17_s1 = inlined_call_operand.hbm [shape: f32[2,4,16,16], index: 1, kind: output, shape index: {}, may-alias: {0,1}]  }

</bundles_post_ra>
